<compile_context>
chip_gen: v6e
topology: v6e:2x2x1
jax: 0.10.0
libtpu: 0.0.40
codegen_flags: <defaults>
</compile_context>

<pallas_src>
import functools

import jax
import jax.numpy as jnp
from jax.experimental import pallas as pl
from jax.experimental.pallas import tpu as pltpu

LANE = 128        # feature dims padded to multiples of this (lane-dense)
ROW_ALIGN = 256   # node dimension padded to multiples of this


def _round_up(v, m):
    return ((v + m - 1) // m) * m


def _pick_tiles(n_pad):
    # Row tile: use 512 only when it still leaves >=2 row tiles (keeps both
    # v7x TensorCores busy); otherwise 256.
    tm = 512 if (n_pad % 512 == 0 and n_pad // 512 >= 2) else 256
    # Reduction tile: as big as divides n_pad (mem-bound -> amortize the
    # per-grid-step overhead), up to 1024.
    tk = 256
    for cand in (512, 1024):
        if n_pad % cand == 0:
            tk = cand
    return tm, tk


def _vmem_limit_bytes(tm, tk, cin_pad, cout_pad, out_itemsize):
    a = 2 * tm * tk * 1                 # int8 A tiles, double-buffered
    xk = 2 * tk * cin_pad * 2           # bf16 neighbor-feature tiles
    xi = 2 * tm * cin_pad * 2           # bf16 self-feature tiles
    invd = 2 * tm * 4                   # f32 1/deg tiles
    w = 2 * cin_pad * cout_pad * 2      # W_l + W_r, bf16, single-buffered
    b = cout_pad * 4                    # f32 bias, single-buffered
    out = 2 * tm * cout_pad * out_itemsize
    acc = tm * cin_pad * 4              # f32 accumulator scratch
    need = a + xk + xi + invd + w + b + out + acc
    # 2x headroom for compiler-internal scratch; never claim all of v7x VMEM.
    return int(min(48 * 1024 * 1024, max(2 * need, 16 * 1024 * 1024)))


# ----------------------------------------------------------------------------
# Pallas kernel: one fused SAGEConv layer (+ activation), tiled over (i, k)
# ----------------------------------------------------------------------------
def _sage_layer_kernel(a_ref, invdeg_ref, xk_ref, xi_ref, wl_ref, wr_ref,
                       b_ref, o_ref, acc_ref, *, activation, out_valid):
    # a_ref     : (TM, TK)             int8  0/1 edge counts (dst x src) tile
    # invdeg_ref: (TM, 1)              f32   per-row 1/deg
    # xk_ref    : (TK, Cin_pad)        bf16  neighbor-feature tile (reduction)
    # xi_ref    : (TM, Cin_pad)        bf16  self-feature tile (row axis)
    # wl_ref    : (Cin_pad, Cout_pad)  bf16  lin_l weight (aggregated features)
    # wr_ref    : (Cin_pad, Cout_pad)  bf16  lin_r weight (self features)
    # b_ref     : (1, Cout_pad)        f32   lin_l bias
    # o_ref     : (TM, Cout_pad)             output tile (resident across k)
    # acc_ref   : (TM, Cin_pad)        f32   sum-aggregation accumulator
    k = pl.program_id(1)

    @pl.when(k == 0)
    def _():
        acc_ref[...] = jnp.zeros_like(acc_ref)

    # Partial sum aggregation on the MXU: int8 counts widened to bf16 (the
    # widen is a VPU op hidden under the DMA), f32 accumulation.
    acc_ref[...] += jnp.dot(a_ref[...].astype(jnp.bfloat16), xk_ref[...],
                            preferred_element_type=jnp.float32)

    @pl.when(k == pl.num_programs(1) - 1)
    def _():
        # Exact mean: apply the f32 per-row 1/deg once in the epilogue.
        aggr = acc_ref[...] * invdeg_ref[...]
        # Split bf16 projection (full-rate MXU, no f32 concat buffer):
        #   h = mean_aggr @ W_l + x_i @ W_r + b
        h = jnp.dot(aggr.astype(jnp.bfloat16), wl_ref[...],
                    preferred_element_type=jnp.float32)
        h = h + jnp.dot(xi_ref[...], wr_ref[...],
                        preferred_element_type=jnp.float32)
        h = h + b_ref[...]

        if activation == "relu":
            h = jnp.maximum(h, 0.0)
        elif activation == "log_softmax":
            # Mask padded output lanes so they do not affect the softmax,
            # then store 0.0 in them so the padded buffer stays finite.
            lane = jax.lax.broadcasted_iota(jnp.int32, h.shape, 1)
            valid = lane < out_valid
            h = jnp.where(valid, h, -jnp.inf)
            m = jnp.max(h, axis=-1, keepdims=True)
            s = h - m
            h = s - jnp.log(jnp.sum(jnp.exp(s), axis=-1, keepdims=True))
            h = jnp.where(valid, h, 0.0)
        # "none" -> identity

        o_ref[...] = h.astype(o_ref.dtype)


def sage_layer(a_cnt, inv_deg, x, w_l, w_r, b, *, activation, out_valid,
               out_dtype):
    """One SAGEConv layer + activation as a tiled, pipelined Pallas kernel."""
    n_pad = a_cnt.shape[0]
    cin_pad = x.shape[1]
    cout_pad = w_l.shape[1]
    tm, tk = _pick_tiles(n_pad)
    grid = (n_pad // tm, n_pad // tk)

    kernel = functools.partial(_sage_layer_kernel, activation=activation,
                               out_valid=out_valid)
    resident = pl.Buffered(1)  # constant-index blocks: no double buffer

    return pl.pallas_call(
        kernel,
        out_shape=jax.ShapeDtypeStruct((n_pad, cout_pad), out_dtype),
        grid_spec=pltpu.PrefetchScalarGridSpec(
            num_scalar_prefetch=0,
            grid=grid,
            in_specs=[
                pl.BlockSpec((tm, tk), lambda i, k: (i, k)),        # A (int8)
                pl.BlockSpec((tm, 1), lambda i, k: (i, 0)),         # 1/deg
                pl.BlockSpec((tk, cin_pad), lambda i, k: (k, 0)),   # X (nbrs)
                pl.BlockSpec((tm, cin_pad), lambda i, k: (i, 0)),   # X (self)
                pl.BlockSpec((cin_pad, cout_pad), lambda i, k: (0, 0),
                             pipeline_mode=resident),               # W_l
                pl.BlockSpec((cin_pad, cout_pad), lambda i, k: (0, 0),
                             pipeline_mode=resident),               # W_r
                pl.BlockSpec((1, cout_pad), lambda i, k: (0, 0),
                             pipeline_mode=resident),               # bias
            ],
            out_specs=pl.BlockSpec((tm, cout_pad), lambda i, k: (i, 0)),
            scratch_shapes=[pltpu.VMEM((tm, cin_pad), jnp.float32)],
        ),
        compiler_params=pltpu.CompilerParams(
            dimension_semantics=("parallel", "arbitrary"),
            vmem_limit_bytes=_vmem_limit_bytes(
                tm, tk, cin_pad, cout_pad, jnp.dtype(out_dtype).itemsize),
        ),
    )(a_cnt, inv_deg, x, x, w_l, w_r, b)


# ----------------------------------------------------------------------------
# Glue: int8 edge-count adjacency + f32 inverse degrees, padded
# ----------------------------------------------------------------------------
def build_adjacency(edge_index, n_pad):
    # edge_index: (2, E) int32, row 0 = source j, row 1 = target i (message j->i)
    src = edge_index[0]
    dst = edge_index[1]
    a_cnt = jnp.zeros((n_pad, n_pad), jnp.int8).at[dst, src].add(1)
    deg = jnp.zeros((n_pad,), jnp.float32).at[dst].add(1.0)
    inv_deg = 1.0 / jnp.maximum(deg, 1.0)   # isolated nodes -> zero aggregation
    return a_cnt, inv_deg[:, None]          # (N,N) int8, (N,1) f32


# ----------------------------------------------------------------------------
# GraphSAGENet: parameters + forward
# ----------------------------------------------------------------------------
def init_sage_params(key, in_c, out_c):
    k1, k2 = jax.random.split(key)
    scale = 1.0 / jnp.sqrt(jnp.float32(in_c))
    w_l = jax.random.uniform(k1, (in_c, out_c), jnp.float32, -scale, scale)
    w_r = jax.random.uniform(k2, (in_c, out_c), jnp.float32, -scale, scale)
    b_l = jnp.zeros((out_c,), jnp.float32)

    cin_pad = _round_up(in_c, LANE)
    cout_pad = _round_up(out_c, LANE)
    # bf16 weights feed the MXU at full rate; accumulation stays f32 in-kernel.
    w_l_p = jnp.zeros((cin_pad, cout_pad), jnp.bfloat16)
    w_l_p = w_l_p.at[:in_c, :out_c].set(w_l.astype(jnp.bfloat16))
    w_r_p = jnp.zeros((cin_pad, cout_pad), jnp.bfloat16)
    w_r_p = w_r_p.at[:in_c, :out_c].set(w_r.astype(jnp.bfloat16))
    b = jnp.zeros((1, cout_pad), jnp.float32).at[0, :out_c].set(b_l)
    return {"w_l": w_l_p, "w_r": w_r_p, "b": b, "out_valid": out_c}


def init_graphsage_net(key, in_channels, hidden_channels, out_channels,
                       num_layers):
    keys = jax.random.split(key, num_layers)
    params = [init_sage_params(keys[0], in_channels, hidden_channels)]
    for i in range(num_layers - 2):
        params.append(init_sage_params(keys[1 + i], hidden_channels,
                                       hidden_channels))
    params.append(init_sage_params(keys[-1], hidden_channels, out_channels))
    return params


def graphsage_net_forward(params, x, edge_index):
    n, in_c = x.shape
    n_pad = _round_up(n, ROW_ALIGN)
    cin_pad = _round_up(in_c, LANE)

    a_cnt, inv_deg = build_adjacency(edge_index, n_pad)

    # pad nodes + feature lanes; hidden activations travel in bf16
    h = jnp.zeros((n_pad, cin_pad), jnp.bfloat16).at[:n, :in_c].set(
        x.astype(jnp.bfloat16))

    num_layers = len(params)
    for li, p in enumerate(params):
        last = li == num_layers - 1
        h = sage_layer(
            a_cnt, inv_deg, h, p["w_l"], p["w_r"], p["b"],
            activation="log_softmax" if last else "relu",
            out_valid=p["out_valid"],
            out_dtype=jnp.float32 if last else jnp.bfloat16,
        )

    out_c = params[-1]["out_valid"]
    return h[:n, :out_c]


if __name__ == "__main__":
    key = jax.random.PRNGKey(0)
    k_x, k_e, k_p = jax.random.split(key, 3)

    num_nodes = 16
    num_edges = 40
    in_channels = 8
    hidden_channels = 32
    out_channels = 8
    num_layers = 3

    x = jax.random.normal(k_x, (num_nodes, in_channels), jnp.float32)
    edge_index = jax.random.randint(k_e, (2, num_edges), 0, num_nodes,
                                    jnp.int32)

    params = init_graphsage_net(k_p, in_channels, hidden_channels,
                                out_channels, num_layers)

    out = graphsage_net_forward(params, x, edge_index)
    out = jax.block_until_ready(out)

    assert out.shape == (num_nodes, out_channels)
    # log_softmax rows should exponentiate-sum to ~1
    assert bool(jnp.allclose(jnp.sum(jnp.exp(out), axis=-1), 1.0, atol=1e-3))
    print("KERNEL_OK")
</pallas_src>

<mosaic_0001>
module attributes {stable_mosaic.version = 11 : i64} {
  func.func @_sage_layer_kernel(%arg0: i32, %arg1: i32, %arg2: memref<256x256xi8, #tpu.memory_space<vmem>>, %arg3: memref<256x1xf32, #tpu.memory_space<vmem>>, %arg4: memref<256x128xbf16, #tpu.memory_space<vmem>>, %arg5: memref<256x128xbf16, #tpu.memory_space<vmem>>, %arg6: memref<128x128xbf16, #tpu.memory_space<vmem>>, %arg7: memref<128x128xbf16, #tpu.memory_space<vmem>>, %arg8: memref<1x128xf32, #tpu.memory_space<vmem>>, %arg9: memref<256x128xbf16, #tpu.memory_space<vmem>>, %arg10: memref<256x128xf32, #tpu.memory_space<vmem>>) attributes {dimension_semantics = [#tpu.dimension_semantics<parallel>, #tpu.dimension_semantics<arbitrary>], iteration_bounds = array<i64: 1, 1>, scalar_prefetch = 0 : i64, scratch_operands = 1 : i64, tpu.core_type = #tpu.core_type<tc>, window_params = [{transform_indices = @transform_0, window_bounds = array<i64: 256, 256>}, {transform_indices = @transform_1, window_bounds = array<i64: 256, 1>}, {transform_indices = @transform_2, window_bounds = array<i64: 256, 128>}, {transform_indices = @transform_3, window_bounds = array<i64: 256, 128>}, {pipeline_mode = #tpu.pipeline_mode<synchronous>, transform_indices = @transform_4, window_bounds = array<i64: 128, 128>}, {pipeline_mode = #tpu.pipeline_mode<synchronous>, transform_indices = @transform_5, window_bounds = array<i64: 128, 128>}, {pipeline_mode = #tpu.pipeline_mode<synchronous>, transform_indices = @transform_6, window_bounds = array<i64: 1, 128>}, {transform_indices = @transform_7, window_bounds = array<i64: 256, 128>}]} {
    %c0_i32 = arith.constant 0 : i32
    %0 = arith.cmpi eq, %arg1, %c0_i32 : i32
    %1 = arith.extui %0 : i1 to i32
    %c0_i32_0 = arith.constant 0 : i32
    %2 = arith.cmpi ne, %1, %c0_i32_0 : i32
    scf.if %2 {
      %cst_10 = arith.constant 0.000000e+00 : f32
      %13 = vector.broadcast %cst_10 : f32 to vector<256x128xf32>
      %c0_11 = arith.constant 0 : index
      %c0_12 = arith.constant 0 : index
      %14 = vector.load %arg10[%c0_11, %c0_12] : memref<256x128xf32, #tpu.memory_space<vmem>>, vector<256x128xf32>
      tpu.vector_store %arg10[%c0_11, %c0_12], %13 {strides = array<i32>} : memref<256x128xf32, #tpu.memory_space<vmem>>, vector<256x128xf32>,
    } else {
    }
    %c0 = arith.constant 0 : index
    %c0_1 = arith.constant 0 : index
    %3 = vector.load %arg10[%c0, %c0_1] : memref<256x128xf32, #tpu.memory_space<vmem>>, vector<256x128xf32>
    %c0_2 = arith.constant 0 : index
    %c0_3 = arith.constant 0 : index
    %4 = vector.load %arg2[%c0_2, %c0_3] : memref<256x256xi8, #tpu.memory_space<vmem>>, vector<256x256xi8>
    %5 = arith.sitofp %4 : vector<256x256xi8> to vector<256x256xbf16>
    %c0_4 = arith.constant 0 : index
    %c0_5 = arith.constant 0 : index
    %6 = vector.load %arg4[%c0_4, %c0_5] : memref<256x128xbf16, #tpu.memory_space<vmem>>, vector<256x128xbf16>
    %cst = arith.constant dense<0.000000e+00> : vector<256x128xf32>
    %7 = tpu.matmul %5, %6, %cst {dimension_numbers = #tpu.dot_dimension_numbers<[1], [0], [0], [1], [0, 0, 1, 1], [], []>} : vector<256x256xbf16>, vector<256x128xbf16>, vector<256x128xf32> -> vector<256x128xf32>
    %8 = arith.addf %3, %7 : vector<256x128xf32>
    %c0_6 = arith.constant 0 : index
    %c0_7 = arith.constant 0 : index
    %9 = vector.load %arg10[%c0_6, %c0_7] : memref<256x128xf32, #tpu.memory_space<vmem>>, vector<256x128xf32>
    tpu.vector_store %arg10[%c0_6, %c0_7], %8 {strides = array<i32>} : memref<256x128xf32, #tpu.memory_space<vmem>>, vector<256x128xf32>,
    %c0_i32_8 = arith.constant 0 : i32
    %10 = arith.cmpi eq, %arg1, %c0_i32_8 : i32
    %11 = arith.extui %10 : i1 to i32
    %c0_i32_9 = arith.constant 0 : i32
    %12 = arith.cmpi ne, %11, %c0_i32_9 : i32
    scf.if %12 {
      %c0_10 = arith.constant 0 : index
      %c0_11 = arith.constant 0 : index
      %13 = vector.load %arg10[%c0_10, %c0_11] : memref<256x128xf32, #tpu.memory_space<vmem>>, vector<256x128xf32>
      %c0_12 = arith.constant 0 : index
      %c0_13 = arith.constant 0 : index
      %14 = vector.load %arg3[%c0_12, %c0_13] : memref<256x1xf32, #tpu.memory_space<vmem>>, vector<256x1xf32>
      %15 = vector.broadcast %14 : vector<256x1xf32> to vector<256x128xf32>
      %16 = arith.mulf %13, %15 : vector<256x128xf32>
      %17 = arith.truncf %16 : vector<256x128xf32> to vector<256x128xbf16>
      %c0_14 = arith.constant 0 : index
      %c0_15 = arith.constant 0 : index
      %18 = vector.load %arg6[%c0_14, %c0_15] : memref<128x128xbf16, #tpu.memory_space<vmem>>, vector<128x128xbf16>
      %cst_16 = arith.constant dense<0.000000e+00> : vector<256x128xf32>
      %19 = tpu.matmul %17, %18, %cst_16 {dimension_numbers = #tpu.dot_dimension_numbers<[1], [0], [0], [1], [0, 0, 1, 1], [], []>} : vector<256x128xbf16>, vector<128x128xbf16>, vector<256x128xf32> -> vector<256x128xf32>
      %c0_17 = arith.constant 0 : index
      %c0_18 = arith.constant 0 : index
      %20 = vector.load %arg5[%c0_17, %c0_18] : memref<256x128xbf16, #tpu.memory_space<vmem>>, vector<256x128xbf16>
      %c0_19 = arith.constant 0 : index
      %c0_20 = arith.constant 0 : index
      %21 = vector.load %arg7[%c0_19, %c0_20] : memref<128x128xbf16, #tpu.memory_space<vmem>>, vector<128x128xbf16>
      %cst_21 = arith.constant dense<0.000000e+00> : vector<256x128xf32>
      %22 = tpu.matmul %20, %21, %cst_21 {dimension_numbers = #tpu.dot_dimension_numbers<[1], [0], [0], [1], [0, 0, 1, 1], [], []>} : vector<256x128xbf16>, vector<128x128xbf16>, vector<256x128xf32> -> vector<256x128xf32>
      %23 = arith.addf %19, %22 : vector<256x128xf32>
      %c0_22 = arith.constant 0 : index
      %c0_23 = arith.constant 0 : index
      %24 = vector.load %arg8[%c0_22, %c0_23] : memref<1x128xf32, #tpu.memory_space<vmem>>, vector<1x128xf32>
      %25 = vector.broadcast %24 : vector<1x128xf32> to vector<256x128xf32>
      %26 = arith.addf %23, %25 : vector<256x128xf32>
      %cst_24 = arith.constant 0.000000e+00 : f32
      %27 = vector.broadcast %cst_24 : f32 to vector<256x128xf32>
      %28 = arith.maximumf %26, %27 : vector<256x128xf32>
      %29 = arith.truncf %28 : vector<256x128xf32> to vector<256x128xbf16>
      %c0_25 = arith.constant 0 : index
      %c0_26 = arith.constant 0 : index
      %30 = vector.load %arg9[%c0_25, %c0_26] : memref<256x128xbf16, #tpu.memory_space<vmem>>, vector<256x128xbf16>
      tpu.vector_store %arg9[%c0_25, %c0_26], %29 {strides = array<i32>} : memref<256x128xbf16, #tpu.memory_space<vmem>>, vector<256x128xbf16>,
    } else {
    }
    return
  }
  func.func @transform_0(%arg0: i32, %arg1: i32) -> (i32, i32) {
    %c0_i32 = arith.constant 0 : i32
    return %arg0, %arg1 : i32, i32
  }
  func.func @transform_1(%arg0: i32, %arg1: i32) -> (i32, i32) {
    %c0_i32 = arith.constant 0 : i32
    %c0_i32_0 = arith.constant 0 : i32
    return %arg0, %c0_i32 : i32, i32
  }
  func.func @transform_2(%arg0: i32, %arg1: i32) -> (i32, i32) {
    %c0_i32 = arith.constant 0 : i32
    %c0_i32_0 = arith.constant 0 : i32
    return %arg1, %c0_i32 : i32, i32
  }
  func.func @transform_3(%arg0: i32, %arg1: i32) -> (i32, i32) {
    %c0_i32 = arith.constant 0 : i32
    %c0_i32_0 = arith.constant 0 : i32
    return %arg0, %c0_i32 : i32, i32
  }
  func.func @transform_4(%arg0: i32, %arg1: i32) -> (i32, i32) {
    %c0_i32 = arith.constant 0 : i32
    %c0_i32_0 = arith.constant 0 : i32
    %c0_i32_1 = arith.constant 0 : i32
    return %c0_i32, %c0_i32_0 : i32, i32
  }
  func.func @transform_5(%arg0: i32, %arg1: i32) -> (i32, i32) {
    %c0_i32 = arith.constant 0 : i32
    %c0_i32_0 = arith.constant 0 : i32
    %c0_i32_1 = arith.constant 0 : i32
    return %c0_i32, %c0_i32_0 : i32, i32
  }
  func.func @transform_6(%arg0: i32, %arg1: i32) -> (i32, i32) {
    %c0_i32 = arith.constant 0 : i32
    %c0_i32_0 = arith.constant 0 : i32
    %c0_i32_1 = arith.constant 0 : i32
    return %c0_i32, %c0_i32_0 : i32, i32
  }
  func.func @transform_7(%arg0: i32, %arg1: i32) -> (i32, i32) {
    %c0_i32 = arith.constant 0 : i32
    %c0_i32_0 = arith.constant 0 : i32
    return %arg0, %c0_i32 : i32, i32
  }
}

</mosaic_0001>

<bundles_post_ra>
// kernel: tpu_custom_call.1
= control target key start
LH: loop header
LB: loop body
LE: loop exit
PB: predicated region body
PF: predicated region fallthrough
CT: control target
= control target key end

     0   :  { %12 = vsyncpa [#allocation4], 0  ;;  %s2643_s0 = inlined_call_operand.vmem [shape: s8[256,256], index: 0, kind: input, shape index: {}]   ;;  %s2644_s1 = inlined_call_operand.vmem [shape: f32[256,1], index: 1, kind: input, shape index: {}]   ;;  %s2645_s2 = inlined_call_operand.vmem [shape: bf16[256,128], index: 2, kind: input, shape index: {}]   ;;  %s2646_s3 = inlined_call_operand.hbm [shape: bf16[256,128], index: 3, kind: input, shape index: {}]   ;;  %s2647_s4 = inlined_call_operand.hbm [shape: bf16[128,128], index: 4, kind: input, shape index: {}]   ;;  %s2648_s5 = inlined_call_operand.hbm [shape: bf16[128,128], index: 5, kind: input, shape index: {}]   ;;  %s2649_s6 = inlined_call_operand.vmem [shape: f32[1,128], index: 6, kind: input, shape index: {}]   ;;  %s2650_s7 = inlined_call_operand.hbm [shape: bf16[256,128], index: 7, kind: output, shape index: {}]  }
   0x1   :  { %13 = vsyncpa [#allocation7], 0 }
   0x2   :  { %14 = vsyncpa [#allocation5], 0  ;;  %s2247_s24 = smov [#allocation6]   ;;  %s2248_s26 = smov [#allocation3]  }
   0x3   :  { %s38_s25 = sshll.u32 %s2247_s24, 4  ;;  %s26_s27 = sshll.u32 %s2248_s26, 4  ;;  %s39_s25 = int_to_ptr.vmem [resolvable:$true] %s38_s25  ;;  %s27_s27 = int_to_ptr.vmem [resolvable:$true] %s26_s27 }
   0x4   :  { %s2169_s28 = scalar_lea.vmem %s39_s25, 1024  ;;  %p2174_p1 = scmp.lt.s32.totalorder %s39_s25, %s39_s25 }
   0x5   :  { %p2170_p0 = scmp.ne.s32.totalorder %s39_s25, %s2169_s28  ;;  %p2175_p2 = scmp.lt.s32.totalorder %s2169_s28, %s2169_s28 }
   0x7   :  { %p2176_p3 = por %p2175_p2, %p2174_p1 }
   0x9   :  { %p2177_p4 = pnand %p2176_p3, %p2170_p0 }
   0xb   :  { %2180 = shalt.err (!%p2177_p4)
}
   0xc   :  { %s2249_s29 = smov 64   ;;  %s2250_s30 = smov 4  }
   0xd   :  { %44 = dma.hbm_to_vmem [thread:$0]  %s2647_s4, 1024, %s39_s25, [#allocation7], %s2249_s29, %s2249_s29, %s2250_s30  }
   0xe   :  { %s2189_s10 = scalar_lea.vmem %s27_s27, 2048  ;;  %p2194_p6 = scmp.lt.s32.totalorder %s27_s27, %s27_s27 }
   0xf   :  { %p2190_p5 = scmp.ne.s32.totalorder %s27_s27, %s2189_s10  ;;  %p2195_p7 = scmp.lt.s32.totalorder %s2189_s10, %s2189_s10 }
  0x11   :  { %p2196_p8 = por %p2195_p7, %p2194_p6 }
  0x13   :  { %p2197_p9 = pnand %p2196_p8, %p2190_p5 }
  0x15   :  { %2200 = shalt.err (!%p2197_p9)
}
  0x16   :  { %32 = dma.hbm_to_vmem [thread:$0]  %s2646_s3, 2048, %s27_s27, [#allocation4], %s2249_s29, %s2249_s29, %s2250_s30  }
  0x17   :  { %s2251_s13 = smov [#allocation8]  }
  0x18   :  { %s50_s14 = sshll.u32 %s2251_s13, 4  ;;  %s51_s14 = int_to_ptr.vmem [resolvable:$true] %s50_s14 }
  0x19   :  { %s2209_s15 = scalar_lea.vmem %s51_s14, 1024  ;;  %p2214_p11 = scmp.lt.s32.totalorder %s51_s14, %s51_s14 }
  0x1a   :  { %p2210_p10 = scmp.ne.s32.totalorder %s51_s14, %s2209_s15  ;;  %p2215_p12 = scmp.lt.s32.totalorder %s2209_s15, %s2209_s15 }
  0x1c   :  { %p2216_p13 = por %p2215_p12, %p2214_p11 }
  0x1e   :  { %p2217_p0 = pnand %p2216_p13, %p2210_p10 }
  0x20   :  { %2220 = shalt.err (!%p2217_p0)
}
  0x21   :  { %56 = dma.hbm_to_vmem [thread:$0]  %s2648_s5, 1024, %s51_s14, [#allocation7], %s2249_s29, %s2249_s29, %s2250_s30  }
  0x22   :  { %2241 = dma.done.wait [#allocation4], 2048  }
  0x23   :  { %2242 = vsyncadd [#allocation4], 4294965248 }
  0x24   :  { %2243 = dma.done.wait [#allocation7], 2048  }
  0x25   :  { %2244 = vsyncadd [#allocation7], 4294965248  ;;  %v2252_v0 = vmov 0   ;;  %v2113_v1 = vld [vmem:[%s2645_s2 + $0x78] sm:$0xff]   ;;  %v2115_v3 = vld [vmem:[%s2645_s2 + $0x70] sm:$0xff]  }
  0x26   :  { %2111 = vset.pattern.permute.xlu0 %v2252_v0  ;;  %2112 = vset.pattern.permute.xlu1 %v2252_v0  ;;  %v2114_v2 = vld [vmem:[%s2645_s2 + $0x38] sm:$0xff]   ;;  %v2116_v4 = vld [vmem:[%s2645_s2 + $0x30] sm:$0xff]   ;;  %v2117_v5 = vld [vmem:[%s2645_s2 + $0x68] sm:$0xff]  }
  0x27   :  { %1848 = vmatprep.subr.bf16.mxu0 %v2113_v1  ;;  %v2118_v6 = vld [vmem:[%s2645_s2 + $0x28] sm:$0xff]   ;;  %v2119_v7 = vld [vmem:[%s2645_s2 + $0x60] sm:$0xff]   ;;  %v2121_v9 = vld [vmem:[%s2645_s2 + $0x58] sm:$0xff]  }
  0x28   :  { %1849 = vmatpush3.bf16.msra.mxu0 %v2114_v2  ;;  %v2120_v8 = vld [vmem:[%s2645_s2 + $0x20] sm:$0xff]   ;;  %v2122_v10 = vld [vmem:[%s2645_s2 + $0x18] sm:$0xff]   ;;  %v2123_v11 = vld [vmem:[%s2645_s2 + $0x50] sm:$0xff]  }
  0x29   :  { %1850 = vmatprep.subr.bf16.mxu0 %v2115_v3  ;;  %v138_v12 = vld [vmem:[%s2643_s0 + $0x8] sm:$0xff]  ;;  %v2124_v14 = vld [vmem:[%s2645_s2 + $0x10] sm:$0xff]   ;;  %v573_v15 = vld [vmem:[%s2644_s1] sm:$0xff] }
  0x2a   :  { %v154_v13 = vunpack.c.l.s8.bf16 %v138_v12  ;;  %v575_v16 = vld [vmem:[%s2644_s1 + $0x10] sm:$0xff]  ;;  %v2125_v17 = vld [vmem:[%s2645_s2 + $0x48] sm:$0xff]   ;;  %607 = vperm.xlu0 %2111, %v573_v15   ;;  %v576_v19 = vld [vmem:[%s2644_s1 + $0x18] sm:$0xff]  ;;  %v156_v31 = vunpack.c.h.s8.bf16 %v138_v12 }
  0x2b   :  { %617 = vperm.xlu1 %2112, %v575_v16   ;;  %v574_v18 = vld [vmem:[%s2644_s1 + $0x8] sm:$0xff]  ;;  %v2127_v21 = vld [vmem:[%s2645_s2 + $0x40] sm:$0xff]   ;;  %v2129_v26 = vld [vmem:[#allocation8 + $0x38] sm:$0xff]  }
  0x2c   :  { %1851 = vmatpush3.bf16.msra.mxu0 %v2116_v4  ;;  %345 = vmatprep.mubr.bf16.mxu0 %v154_v13  ;;  %v2126_v20 = vld [vmem:[%s2645_s2 + $0x8] sm:$0xff]   ;;  %v577_v22 = vld [vmem:[%s2644_s1 + $0x20] sm:$0xff]  ;;  %v579_v27 = vld [vmem:[%s2644_s1 + $0x30] sm:$0xff] }
  0x2d   :  { %1852 = vmatprep.subr.bf16.mxu0 %v2117_v5  ;;  %v578_v23 = vld [vmem:[%s2644_s1 + $0x28] sm:$0xff]  ;;  %v2128_v24 = vld [vmem:[%s2645_s2] sm:$0xff]   ;;  %v580_v29 = vld [vmem:[%s2644_s1 + $0x38] sm:$0xff]  ;;  %2008 = vmatprep.subr.bf16.mxu1 %v2129_v26 }
  0x2e   :  { %612 = vperm.xlu0 %2111, %v574_v18   ;;  %v137_v25 = vld [vmem:[%s2643_s0] sm:$0xff]  ;;  %v2130_v30 = vld [vmem:[#allocation8 + $0x30] sm:$0xff]   ;;  %2009 = vmatpush3.bf16.msra.mxu1 %v2129_v26  ;;  %v2131_v32 = vld [vmem:[#allocation8 + $0x28] sm:$0xff]  }
  0x2f   :  { %622 = vperm.xlu1 %2112, %v576_v19   ;;  %v153_v28 = vunpack.c.l.s8.bf16 %v137_v25  ;;  %2010 = vmatprep.subr.bf16.mxu1 %v2130_v30  ;;  %v581_v33 = vld [vmem:[%s2644_s1 + $0x40] sm:$0xff]  ;;  %v582_v34 = vld [vmem:[%s2644_s1 + $0x48] sm:$0xff]  ;;  %v140_v35 = vld [vmem:[%s2643_s0 + $0x18] sm:$0xff]  ;;  %v155_v38 = vunpack.c.h.s8.bf16 %v137_v25 }
  0x30   :  { %1853 = vmatpush3.bf16.msra.mxu0 %v2118_v6  ;;  %v2132_v36 = vld [vmem:[#allocation8 + $0x20] sm:$0xff]   ;;  %v583_v37 = vld [vmem:[%s2644_s1 + $0x50] sm:$0xff]  ;;  %v584_v39 = vld [vmem:[%s2644_s1 + $0x58] sm:$0xff]  ;;  %v158_v40 = vunpack.c.l.s8.bf16 %v140_v35  ;;  %v160_v50 = vunpack.c.h.s8.bf16 %v140_v35 }
  0x31   :  { %1854 = vmatprep.subr.bf16.mxu0 %v2119_v7  ;;  %v2133_v41 = vld [vmem:[#allocation8 + $0x18] sm:$0xff]   ;;  %v2137_v42 = vld [vmem:[#allocation3] sm:$0xff]   ;;  %v586_v44 = vld [vmem:[%s2644_s1 + $0x68] sm:$0xff] }
  0x32   :  { %627 = vperm.xlu0 %2111, %v577_v22   ;;  %2011 = vmatpush3.bf16.msra.mxu1 %v2130_v30  ;;  %v585_v43 = vld [vmem:[%s2644_s1 + $0x60] sm:$0xff]  ;;  %v139_v45 = vld [vmem:[%s2643_s0 + $0x10] sm:$0xff]  ;;  %v588_v49 = vld [vmem:[%s2644_s1 + $0x78] sm:$0xff] }
  0x33   :  { %632 = vperm.xlu1 %2112, %v578_v23   ;;  %2012 = vmatprep.subr.bf16.mxu1 %v2131_v32  ;;  %v2134_v46 = vld [vmem:[#allocation8 + $0x10] sm:$0xff]   ;;  %v157_v48 = vunpack.c.l.s8.bf16 %v139_v45  ;;  %v2135_v51 = vld [vmem:[#allocation8 + $0x8] sm:$0xff]   ;;  %v589_v52 = vld [vmem:[%s2644_s1 + $0x80] sm:$0xff]  ;;  %v159_v58 = vunpack.c.h.s8.bf16 %v139_v45 }
  0x34   :  { %1855 = vmatpush3.bf16.msra.mxu0 %v2120_v8  ;;  %2024 = vmatprep.mubr.bf16.mxu1 %v2137_v42  ;;  %v587_v47 = vld [vmem:[%s2644_s1 + $0x70] sm:$0xff]  ;;  %v142_v53 = vld [vmem:[%s2643_s0 + $0x28] sm:$0xff]  ;;  %v2136_v56 = vld [vmem:[#allocation8] sm:$0xff]  }
  0x35   :  { %1856 = vmatprep.subr.bf16.mxu0 %v2121_v9  ;;  %v590_v54 = vld [vmem:[%s2644_s1 + $0x88] sm:$0xff]  ;;  %v591_v55 = vld [vmem:[%s2644_s1 + $0x90] sm:$0xff]  ;;  %v592_v57 = vld [vmem:[%s2644_s1 + $0x98] sm:$0xff]  ;;  %v162_v60 = vunpack.c.l.s8.bf16 %v142_v53  ;;  %v164_v6 = vunpack.c.h.s8.bf16 %v142_v53 }
  0x36   :  { %637 = vperm.xlu0 %2111, %v579_v27   ;;  %2013 = vmatpush3.bf16.msra.mxu1 %v2131_v32  ;;  %v2147_v59 = vld [vmem:[#allocation6 + $0x38] sm:$0xff]   ;;  %v593_v61 = vld [vmem:[%s2644_s1 + $0xa0] sm:$0xff]  ;;  %v594_v62 = vld [vmem:[%s2644_s1 + $0xa8] sm:$0xff] }
  0x37   :  { %642 = vperm.xlu1 %2112, %v580_v29   ;;  %2014 = vmatprep.subr.bf16.mxu1 %v2132_v36  ;;  %v2138_v63 = vld [vmem:[#allocation3 + $0x8] sm:$0xff]   ;;  %v141_v0 = vld [vmem:[%s2643_s0 + $0x20] sm:$0xff]  ;;  %v2139_v1 = vld [vmem:[#allocation3 + $0x10] sm:$0xff]  }
  0x38   :  { %1857 = vmatpush3.bf16.msra.mxu0 %v2122_v10  ;;  %v2148_v2 = vld [vmem:[#allocation6 + $0x30] sm:$0xff]   ;;  %v161_v4 = vunpack.c.l.s8.bf16 %v141_v0  ;;  %v596_v5 = vld [vmem:[%s2644_s1 + $0xb8] sm:$0xff]  ;;  %v2151_v7 = vld [vmem:[#allocation6 + $0x28] sm:$0xff]  }
  0x39   :  { %1858 = vmatprep.subr.bf16.mxu0 %v2123_v11  ;;  %v595_v3 = vld [vmem:[%s2644_s1 + $0xb0] sm:$0xff]  ;;  %v597_v8 = vld [vmem:[%s2644_s1 + $0xc0] sm:$0xff]  ;;  %v598_v9 = vld [vmem:[%s2644_s1 + $0xc8] sm:$0xff] }
  0x3a   :  { %647 = vperm.xlu0 %2111, %v581_v33   ;;  %2015 = vmatpush3.bf16.msra.mxu1 %v2132_v36  ;;  %v2140_v10 = vld [vmem:[#allocation3 + $0x18] sm:$0xff]   ;;  %v2141_v11 = vld [vmem:[#allocation3 + $0x20] sm:$0xff]   ;;  %v599_v13 = vld [vmem:[%s2644_s1 + $0xd0] sm:$0xff] }
  0x3b   :  { %652 = vperm.xlu1 %2112, %v582_v34   ;;  %2016 = vmatprep.subr.bf16.mxu1 %v2133_v41  ;;  %v144_v12 = vld [vmem:[%s2643_s0 + $0x38] sm:$0xff]  ;;  %v602_v18 = vld [vmem:[%s2644_s1 + $0xe8] sm:$0xff]  ;;  %v603_v22 = vld [vmem:[%s2644_s1 + $0xf0] sm:$0xff] }
  0x3c   :  { %1859 = vmatpush3.bf16.msra.mxu0 %v2124_v14  ;;  %v163_v14 = vunpack.c.h.s8.bf16 %v141_v0  ;;  %v600_v15 = vld [vmem:[%s2644_s1 + $0xd8] sm:$0xff]  ;;  %v166_v16 = vunpack.c.l.s8.bf16 %v144_v12  ;;  %v2142_v19 = vld [vmem:[#allocation3 + $0x28] sm:$0xff]   ;;  %v168_v25 = vunpack.c.h.s8.bf16 %v144_v12  ;;  %v2145_v27 = vld [vmem:[#allocation3 + $0x40] sm:$0xff]  }
  0x3d   :  { %1860 = vmatprep.subr.bf16.mxu0 %v2125_v17  ;;  %v601_v17 = vld [vmem:[%s2644_s1 + $0xe0] sm:$0xff]  ;;  %v2144_v26 = vld [vmem:[#allocation3 + $0x38] sm:$0xff]   ;;  %v2149_v33 = vld [vmem:[#allocation3 + $0x50] sm:$0xff]  }
  0x3e   :  { %657 = vperm.xlu0 %2111, %v583_v37   ;;  %2017 = vmatpush3.bf16.msra.mxu1 %v2133_v41  ;;  %v145_v32 = vld [vmem:[%s2643_s0 + $0x40] sm:$0xff]  ;;  %v2150_v37 = vld [vmem:[#allocation3 + $0x58] sm:$0xff]   ;;  %v147_v45 = vld [vmem:[%s2643_s0 + $0x50] sm:$0xff] }
  0x3f   :  { %662 = vperm.xlu1 %2112, %v584_v39   ;;  %2018 = vmatprep.subr.bf16.mxu1 %v2134_v46  ;;  %v169_v34 = vunpack.c.l.s8.bf16 %v145_v32  ;;  %v2152_v36 = vld [vmem:[#allocation6 + $0x20] sm:$0xff]   ;;  %v148_v39 = vld [vmem:[%s2643_s0 + $0x58] sm:$0xff]  ;;  %v171_v41 = vunpack.c.h.s8.bf16 %v145_v32  ;;  %v175_v53 = vunpack.c.h.s8.bf16 %v147_v45 }
  0x40   :  { %1861 = vmatpush3.bf16.msra.mxu0 %v2126_v20  ;;  %v143_v20 = vld [vmem:[%s2643_s0 + $0x30] sm:$0xff]  ;;  %v174_v42 = vunpack.c.l.s8.bf16 %v148_v39 }
  0x41   :  { %1862 = vmatprep.subr.bf16.mxu0 %v2127_v21  ;;  %v2143_v21 = vld [vmem:[#allocation3 + $0x30] sm:$0xff]   ;;  %v165_v23 = vunpack.c.l.s8.bf16 %v143_v20  ;;  %v167_v29 = vunpack.c.h.s8.bf16 %v143_v20 }
  0x42   :  { %667 = vperm.xlu0 %2111, %v585_v43   ;;  %2019 = vmatpush3.bf16.msra.mxu1 %v2134_v46  ;;  %v2156_v43 = vld [vmem:[#allocation6 + $0x10] sm:$0xff]  }
  0x43   :  { %672 = vperm.xlu1 %2112, %v586_v44   ;;  %2020 = vmatprep.subr.bf16.mxu1 %v2135_v51  ;;  %v2154_v44 = vld [vmem:[#allocation3 + $0x68] sm:$0xff]   ;;  %v2157_v46 = vld [vmem:[#allocation3 + $0x70] sm:$0xff]  }
  0x44   :  { %1863 = vmatpush3.bf16.msra.mxu0 %v2128_v24  ;;  %v604_v24 = vld [vmem:[%s2644_s1 + $0xf8] sm:$0xff] }
  0x46   :  { %677 = vperm.xlu0 %2111, %v587_v47   ;;  %2021 = vmatpush3.bf16.msra.mxu1 %v2135_v51  ;;  %v2159_v47 = vld [vmem:[#allocation6 + $0x8] sm:$0xff]   ;;  %v2158_v51 = vld [vmem:[#allocation3 + $0x78] sm:$0xff]  }
  0x47   :  { %346 = vmatmul.mubr.bf16.vlgmr.msra.gmra.mxu0 %v153_v28  ;;  %682 = vperm.xlu1 %2112, %v588_v49   ;;  %v146_v28 = vld [vmem:[%s2643_s0 + $0x48] sm:$0xff]  ;;  %v176_v49 = vunpack.c.h.s8.bf16 %v148_v39 }
  0x48   :  { %353 = vmatprep.mubr.bf16.mxu0 %v156_v31  ;;  %2022 = vmatprep.subr.bf16.mxu1 %v2136_v56  ;;  %v170_v30 = vunpack.c.l.s8.bf16 %v146_v28  ;;  %v2146_v31 = vld [vmem:[#allocation3 + $0x48] sm:$0xff]   ;;  %v172_v35 = vunpack.c.h.s8.bf16 %v146_v28 }
  0x4a   :  { %687 = vperm.xlu0 %2111, %v589_v52   ;;  %2023 = vmatpush3.bf16.msra.mxu1 %v2136_v56  ;;  %v150_v52 = vld [vmem:[%s2643_s0 + $0x68] sm:$0xff] }
  0x4b   :  { %692 = vperm.xlu1 %2112, %v590_v54   ;;  %2056 = vmatprep.subr.bf16.mxu1 %v2147_v59  ;;  %v178_v54 = vunpack.c.l.s8.bf16 %v150_v52 }
  0x4d   :  { %2025 = vmatmul.mubr.bf16.vlgmr.msra.gmra.mxu1 %v2138_v63 }
  0x4e   :  { %697 = vperm.xlu0 %2111, %v591_v55   ;;  %2028 = vmatprep.mubr.bf16.mxu1 %v2139_v1  ;;  %v149_v55 = vld [vmem:[%s2643_s0 + $0x60] sm:$0xff] }
  0x4f   :  { %354 = vmatmul.mubr.bf16.gmra.mxu0 %v155_v38  ;;  %702 = vperm.xlu1 %2112, %v592_v57   ;;  %v2153_v38 = vld [vmem:[#allocation3 + $0x60] sm:$0xff]   ;;  %v177_v56 = vunpack.c.l.s8.bf16 %v149_v55  ;;  %v180_v57 = vunpack.c.h.s8.bf16 %v150_v52 }
  0x50   :  { %361 = vmatprep.mubr.bf16.mxu0 %v158_v40  ;;  %2057 = vmatpush3.bf16.msra.mxu1 %v2147_v59  ;;  %v2155_v40 = vld [vmem:[#allocation6 + $0x18] sm:$0xff]   ;;  %v179_v59 = vunpack.c.h.s8.bf16 %v149_v55 }
  0x51   :  { %2058 = vmatprep.subr.bf16.mxu1 %v2148_v2 }
  0x52   :  { %707 = vperm.xlu0 %2111, %v593_v61   ;;  %v151_v61 = vld [vmem:[%s2643_s0 + $0x70] sm:$0xff] }
  0x53   :  { %712 = vperm.xlu1 %2112, %v594_v62   ;;  %v181_v62 = vunpack.c.l.s8.bf16 %v151_v61  ;;  %v183_v0 = vunpack.c.h.s8.bf16 %v151_v61 }
  0x54   :  { %2059 = vmatpush3.bf16.msra.mxu1 %v2148_v2 }
  0x55   :  { %2060 = vmatprep.subr.bf16.mxu1 %v2151_v7  ;;  %2029 = vmatmul.mubr.bf16.gmra.mxu1 %v2140_v10 }
  0x56   :  { %717 = vperm.xlu0 %2111, %v595_v3   ;;  %2032 = vmatprep.mubr.bf16.mxu1 %v2141_v11 }
  0x57   :  { %362 = vmatmul.mubr.bf16.gmra.mxu0 %v157_v48  ;;  %722 = vperm.xlu1 %2112, %v596_v5   ;;  %v173_v48 = vunpack.c.l.s8.bf16 %v147_v45 }
  0x58   :  { %369 = vmatprep.mubr.bf16.mxu0 %v160_v50  ;;  %2061 = vmatpush3.bf16.msra.mxu1 %v2151_v7  ;;  %v2160_v50 = vld [vmem:[#allocation6] sm:$0xff]  }
  0x59   :  { %2062 = vmatprep.subr.bf16.mxu1 %v2152_v36 }
  0x5a   :  { %727 = vperm.xlu0 %2111, %v597_v8  }
  0x5b   :  { %732 = vperm.xlu1 %2112, %v598_v9  }
  0x5c   :  { %2063 = vmatpush3.bf16.msra.mxu1 %v2152_v36 }
  0x5d   :  { %2033 = vmatmul.mubr.bf16.gmra.mxu1 %v2142_v19  ;;  %2064 = vmatprep.subr.bf16.mxu1 %v2155_v40 }
  0x5e   :  { %737 = vperm.xlu0 %2111, %v599_v13   ;;  %2036 = vmatprep.mubr.bf16.mxu1 %v2143_v21 }
  0x5f   :  { %370 = vmatmul.mubr.bf16.gmra.mxu0 %v159_v58  ;;  %742 = vperm.xlu1 %2112, %v600_v15   ;;  %v152_v58 = vld [vmem:[%s2643_s0 + $0x78] sm:$0xff] }
  0x60   :  { %377 = vmatprep.mubr.bf16.mxu0 %v162_v60  ;;  %2065 = vmatpush3.bf16.msra.mxu1 %v2155_v40  ;;  %v182_v60 = vunpack.c.l.s8.bf16 %v152_v58  ;;  %v184_v63 = vunpack.c.h.s8.bf16 %v152_v58 }
  0x61   :  { %2066 = vmatprep.subr.bf16.mxu1 %v2156_v43 }
  0x62   :  { %747 = vperm.xlu0 %2111, %v601_v17  }
  0x63   :  { %752 = vperm.xlu1 %2112, %v602_v18  }
  0x64   :  { %2067 = vmatpush3.bf16.msra.mxu1 %v2156_v43 }
  0x65   :  { %2037 = vmatmul.mubr.bf16.gmra.mxu1 %v2144_v26  ;;  %2068 = vmatprep.subr.bf16.mxu1 %v2159_v47 }
  0x66   :  { %757 = vperm.xlu0 %2111, %v603_v22   ;;  %2040 = vmatprep.mubr.bf16.mxu1 %v2145_v27 }
  0x67   :  { %378 = vmatmul.mubr.bf16.gmra.mxu0 %v161_v4  ;;  %762 = vperm.xlu1 %2112, %v604_v24  }
  0x68   :  { %385 = vmatprep.mubr.bf16.mxu0 %v164_v6  ;;  %2069 = vmatpush3.bf16.msra.mxu1 %v2159_v47 }
  0x69   :  { %2070 = vmatprep.subr.bf16.mxu1 %v2160_v50 }
  0x6c   :  { %2071 = vmatpush3.bf16.msra.mxu1 %v2160_v50 }
  0x6d   :  { %2041 = vmatmul.mubr.bf16.gmra.mxu1 %v2146_v31 }
  0x6e   :  { %2044 = vmatprep.mubr.bf16.mxu1 %v2149_v33 }
  0x6f   :  { %386 = vmatmul.mubr.bf16.gmra.mxu0 %v163_v14 }
  0x70   :  { %393 = vmatprep.mubr.bf16.mxu0 %v166_v16 }
  0x75   :  { %2045 = vmatmul.mubr.bf16.gmra.mxu1 %v2150_v37 }
  0x76   :  { %2048 = vmatprep.mubr.bf16.mxu1 %v2153_v38 }
  0x77   :  { %394 = vmatmul.mubr.bf16.gmra.mxu0 %v165_v23 }
  0x78   :  { %401 = vmatprep.mubr.bf16.mxu0 %v168_v25 }
  0x7d   :  { %2049 = vmatmul.mubr.bf16.gmra.mxu1 %v2154_v44 }
  0x7e   :  { %2052 = vmatprep.mubr.bf16.mxu1 %v2157_v46 }
  0x7f   :  { %402 = vmatmul.mubr.bf16.gmra.mxu0 %v167_v29 }
  0x80   :  { %409 = vmatprep.mubr.bf16.mxu0 %v170_v30 }
  0x85   :  { %2053 = vmatmul.mubr.bf16.gmra.mxu1 %v2158_v51 }
  0x87   :  { %410 = vmatmul.mubr.bf16.gmra.mxu0 %v169_v34 }
  0x88   :  { %417 = vmatprep.mubr.bf16.mxu0 %v172_v35 }
  0x8f   :  { %418 = vmatmul.mubr.bf16.gmra.mxu0 %v171_v41 }
  0x90   :  { %425 = vmatprep.mubr.bf16.mxu0 %v174_v42 }
  0x97   :  { %426 = vmatmul.mubr.bf16.gmra.mxu0 %v173_v48 }
  0x98   :  { %433 = vmatprep.mubr.bf16.mxu0 %v176_v49 }
  0x9f   :  { %434 = vmatmul.mubr.bf16.gmra.mxu0 %v175_v53 }
  0xa0   :  { %441 = vmatprep.mubr.bf16.mxu0 %v178_v54 }
  0xa5   :  { %v608_v2 = vpop.permute.xlu0 %607 }
  0xa6   :  { %v618_v12 = vpop.permute.xlu1 %617 }
  0xa7   :  { %442 = vmatmul.mubr.bf16.gmra.mxu0 %v177_v56 }
  0xa8   :  { %449 = vmatprep.mubr.bf16.mxu0 %v180_v57 }
  0xa9   :  { %v613_v7 = vpop.permute.xlu0 %612 }
  0xaa   :  { %v623_v19 = vpop.permute.xlu1 %622 }
  0xad   :  { %v628_v28 = vpop.permute.xlu0 %627 }
  0xae   :  { %v633_v30 = vpop.permute.xlu1 %632 }
  0xaf   :  { %450 = vmatmul.mubr.bf16.gmra.mxu0 %v179_v59 }
  0xb0   :  { %457 = vmatprep.mubr.bf16.mxu0 %v182_v60 }
  0xb1   :  { %v638_v39 = vpop.permute.xlu0 %637 }
  0xb2   :  { %v643_v41 = vpop.permute.xlu1 %642 }
  0xb5   :  { %v648_v50 = vpop.permute.xlu0 %647 }
  0xb6   :  { %v653_v52 = vpop.permute.xlu1 %652 }
  0xb7   :  { %458 = vmatmul.mubr.bf16.gmra.mxu0 %v181_v62 }
  0xb8   :  { %465 = vmatprep.mubr.bf16.mxu0 %v184_v63 }
  0xb9   :  { %v658_v61 = vpop.permute.xlu0 %657 }
  0xba   :  { %v663_v63 = vpop.permute.xlu1 %662 }
  0xbf   :  { %466 = vmatmul.mubr.bf16.gmra.mxu0 %v183_v0 }
 0x107   :  { %v1864_v1 = vpop.f32.mrf.mxu0 }
 0x109   :  { %v1865_v3 = vpop.f32.mrf.mxu0 }
 0x10a   :  { %v1866_v5 = vadd.f32 %v1865_v3, %v1864_v1 }
 0x10b   :  { %v1867_v4 = vpop.f32.mrf.mxu0 }
 0x10c   :  { %v765_v10 = vmul.f32 %v1866_v5, %v608_v2 }
 0x10d   :  { %v1868_v6 = vpop.f32.mrf.mxu0 }
 0x10e   :  { %v1869_v8 = vadd.f32 %v1868_v6, %v1867_v4 }
 0x10f   :  { %v1870_v9 = vpop.f32.mrf.mxu0 }
 0x110   :  { %v766_v11 = vmul.f32 %v1869_v8, %v613_v7  ;;  %v668_v8 = vpop.permute.xlu0 %667 }
 0x111   :  { %v1871_v13 = vpop.f32.mrf.mxu0 }
 0x112   :  { %v797_v14 = vpack.c.bf16 %v766_v11, %v765_v10  ;;  %v1872_v16 = vadd.f32 %v1871_v13, %v1870_v9  ;;  %v673_v10 = vpop.permute.xlu1 %672 }
 0x113   :  { %v1873_v15 = vpop.f32.mrf.mxu0 }
 0x114   :  { %2072 = vmatprep.mubr.bf16.mxu1 %v797_v14  ;;  %v767_v21 = vmul.f32 %v1872_v16, %v618_v12 }
 0x115   :  { %v1874_v17 = vpop.f32.mrf.mxu0 }
 0x116   :  { %v1875_v18 = vadd.f32 %v1874_v17, %v1873_v15 }
 0x117   :  { %v1876_v20 = vpop.f32.mrf.mxu0 }
 0x118   :  { %v768_v22 = vmul.f32 %v1875_v18, %v623_v19  ;;  %v678_v19 = vpop.permute.xlu0 %677 }
 0x119   :  { %v1877_v23 = vpop.f32.mrf.mxu0 }
 0x11a   :  { %v798_v24 = vpack.c.bf16 %v768_v22, %v767_v21  ;;  %v1878_v26 = vadd.f32 %v1877_v23, %v1876_v20  ;;  %v683_v21 = vpop.permute.xlu1 %682 }
 0x11b   :  { %v1879_v25 = vpop.f32.mrf.mxu0 }
 0x11c   :  { %2073 = vmatmul.mubr.bf16.vlgmr.msra.gmra.mxu1 %v798_v24  ;;  %v769_v32 = vmul.f32 %v1878_v26, %v628_v28 }
 0x11d   :  { %v1880_v27 = vpop.f32.mrf.mxu0 }
 0x11e   :  { %v1881_v29 = vadd.f32 %v1880_v27, %v1879_v25 }
 0x11f   :  { %v1882_v31 = vpop.f32.mrf.mxu0 }
 0x120   :  { %v770_v33 = vmul.f32 %v1881_v29, %v633_v30  ;;  %v688_v30 = vpop.permute.xlu0 %687 }
 0x121   :  { %v1883_v34 = vpop.f32.mrf.mxu0 }
 0x122   :  { %v799_v35 = vpack.c.bf16 %v770_v33, %v769_v32  ;;  %v1884_v37 = vadd.f32 %v1883_v34, %v1882_v31  ;;  %v693_v32 = vpop.permute.xlu1 %692 }
 0x123   :  { %v1885_v36 = vpop.f32.mrf.mxu0 }
 0x124   :  { %2076 = vmatprep.mubr.bf16.mxu1 %v799_v35  ;;  %v771_v43 = vmul.f32 %v1884_v37, %v638_v39 }
 0x125   :  { %v1886_v38 = vpop.f32.mrf.mxu0 }
 0x126   :  { %v1887_v40 = vadd.f32 %v1886_v38, %v1885_v36 }
 0x127   :  { %v1888_v42 = vpop.f32.mrf.mxu0 }
 0x128   :  { %v772_v44 = vmul.f32 %v1887_v40, %v643_v41  ;;  %v698_v41 = vpop.permute.xlu0 %697 }
 0x129   :  { %v1889_v45 = vpop.f32.mrf.mxu0 }
 0x12a   :  { %v800_v46 = vpack.c.bf16 %v772_v44, %v771_v43  ;;  %v1890_v48 = vadd.f32 %v1889_v45, %v1888_v42  ;;  %v703_v43 = vpop.permute.xlu1 %702 }
 0x12b   :  { %v1891_v47 = vpop.f32.mrf.mxu0 }
 0x12c   :  { %2077 = vmatmul.mubr.bf16.gmra.mxu1 %v800_v46  ;;  %v773_v54 = vmul.f32 %v1890_v48, %v648_v50 }
 0x12d   :  { %v1892_v49 = vpop.f32.mrf.mxu0 }
 0x12e   :  { %v1893_v51 = vadd.f32 %v1892_v49, %v1891_v47 }
 0x12f   :  { %v1894_v53 = vpop.f32.mrf.mxu0 }
 0x130   :  { %v774_v55 = vmul.f32 %v1893_v51, %v653_v52  ;;  %v2504_v51 = vpop.f32.mrf.mxu1 }
 0x131   :  { %v1895_v56 = vpop.f32.mrf.mxu0 }
 0x132   :  { %v801_v57 = vpack.c.bf16 %v774_v55, %v773_v54  ;;  %v1896_v59 = vadd.f32 %v1895_v56, %v1894_v53  ;;  %v708_v53 = vpop.permute.xlu0 %707  ;;  %v713_v55 = vpop.permute.xlu1 %712 }
 0x133   :  { %v1897_v58 = vpop.f32.mrf.mxu0 }
 0x134   :  { %2080 = vmatprep.mubr.bf16.mxu1 %v801_v57  ;;  %v775_v1 = vmul.f32 %v1896_v59, %v658_v61  ;;  %v2506_v59 = vpop.f32.mrf.mxu1 }
 0x135   :  { %v1898_v60 = vpop.f32.mrf.mxu0 }
 0x136   :  { %v1899_v62 = vadd.f32 %v1898_v60, %v1897_v58 }
 0x137   :  { %v1900_v0 = vpop.f32.mrf.mxu0 }
 0x138   :  { %v776_v2 = vmul.f32 %v1899_v62, %v663_v63 }
 0x139   :  { %v1901_v3 = vpop.f32.mrf.mxu0 }
 0x13a   :  { %v802_v4 = vpack.c.bf16 %v776_v2, %v775_v1  ;;  %v1902_v6 = vadd.f32 %v1901_v3, %v1900_v0  ;;  %v2508_v0 = vpop.f32.mrf.mxu1  ;;  %v718_v2 = vpop.permute.xlu0 %717 }
 0x13b   :  { %v1903_v5 = vpop.f32.mrf.mxu0 }
 0x13c   :  { %2081 = vmatmul.mubr.bf16.gmra.mxu1 %v802_v4  ;;  %v777_v12 = vmul.f32 %v1902_v6, %v668_v8  ;;  %v723_v4 = vpop.permute.xlu1 %722  ;;  %v2510_v8 = vpop.f32.mrf.mxu1 }
 0x13d   :  { %v1904_v7 = vpop.f32.mrf.mxu0 }
 0x13e   :  { %v1905_v9 = vadd.f32 %v1904_v7, %v1903_v5 }
 0x13f   :  { %v1906_v11 = vpop.f32.mrf.mxu0 }
 0x140   :  { %v778_v13 = vmul.f32 %v1905_v9, %v673_v10 }
 0x141   :  { %v1907_v14 = vpop.f32.mrf.mxu0 }
 0x142   :  { %v803_v15 = vpack.c.bf16 %v778_v13, %v777_v12  ;;  %v1908_v17 = vadd.f32 %v1907_v14, %v1906_v11  ;;  %v2512_v13 = vpop.f32.mrf.mxu1 }
 0x143   :  { %v1909_v16 = vpop.f32.mrf.mxu0 }
 0x144   :  { %2084 = vmatprep.mubr.bf16.mxu1 %v803_v15  ;;  %v779_v23 = vmul.f32 %v1908_v17, %v678_v19  ;;  %v728_v15 = vpop.permute.xlu0 %727  ;;  %v733_v17 = vpop.permute.xlu1 %732 }
 0x145   :  { %v1910_v18 = vpop.f32.mrf.mxu0 }
 0x146   :  { %v1911_v20 = vadd.f32 %v1910_v18, %v1909_v16 }
 0x147   :  { %v1912_v22 = vpop.f32.mrf.mxu0 }
 0x148   :  { %v780_v24 = vmul.f32 %v1911_v20, %v683_v21  ;;  %v2514_v21 = vpop.f32.mrf.mxu1 }
 0x149   :  { %v1913_v25 = vpop.f32.mrf.mxu0 }
 0x14a   :  { %v804_v26 = vpack.c.bf16 %v780_v24, %v779_v23  ;;  %v1914_v28 = vadd.f32 %v1913_v25, %v1912_v22 }
 0x14b   :  { %v1915_v27 = vpop.f32.mrf.mxu0 }
 0x14c   :  { %2085 = vmatmul.mubr.bf16.gmra.mxu1 %v804_v26  ;;  %v781_v34 = vmul.f32 %v1914_v28, %v688_v30  ;;  %v2516_v26 = vpop.f32.mrf.mxu1  ;;  %v738_v28 = vpop.permute.xlu0 %737 }
 0x14d   :  { %v1916_v29 = vpop.f32.mrf.mxu0  ;;  %v743_v30 = vpop.permute.xlu1 %742 }
 0x14e   :  { %v1917_v31 = vadd.f32 %v1916_v29, %v1915_v27 }
 0x14f   :  { %v1918_v33 = vpop.f32.mrf.mxu0 }
 0x150   :  { %v782_v35 = vmul.f32 %v1917_v31, %v693_v32 }
 0x151   :  { %v1919_v36 = vpop.f32.mrf.mxu0 }
 0x152   :  { %v805_v37 = vpack.c.bf16 %v782_v35, %v781_v34  ;;  %v1920_v39 = vadd.f32 %v1919_v36, %v1918_v33  ;;  %v2518_v34 = vpop.f32.mrf.mxu1 }
 0x153   :  { %v1921_v38 = vpop.f32.mrf.mxu0 }
 0x154   :  { %2088 = vmatprep.mubr.bf16.mxu1 %v805_v37  ;;  %v783_v45 = vmul.f32 %v1920_v39, %v698_v41  ;;  %v2520_v39 = vpop.f32.mrf.mxu1  ;;  %v748_v41 = vpop.permute.xlu0 %747 }
 0x155   :  { %v1922_v40 = vpop.f32.mrf.mxu0 }
 0x156   :  { %v1923_v42 = vadd.f32 %v1922_v40, %v1921_v38 }
 0x157   :  { %v1924_v44 = vpop.f32.mrf.mxu0 }
 0x158   :  { %v784_v46 = vmul.f32 %v1923_v42, %v703_v43  ;;  %v753_v43 = vpop.permute.xlu1 %752 }
 0x159   :  { %v1925_v47 = vpop.f32.mrf.mxu0 }
 0x15a   :  { %v806_v48 = vpack.c.bf16 %v784_v46, %v783_v45  ;;  %v1926_v50 = vadd.f32 %v1925_v47, %v1924_v44  ;;  %v2522_v47 = vpop.f32.mrf.mxu1 }
 0x15b   :  { %v1927_v49 = vpop.f32.mrf.mxu0 }
 0x15c   :  { %2089 = vmatmul.mubr.bf16.gmra.mxu1 %v806_v48  ;;  %v785_v57 = vmul.f32 %v1926_v50, %v708_v53  ;;  %v2524_v53 = vpop.f32.mrf.mxu1 }
 0x15d   :  { %v1928_v52 = vpop.f32.mrf.mxu0 }
 0x15e   :  { %v1929_v54 = vadd.f32 %v1928_v52, %v1927_v49 }
 0x15f   :  { %v1930_v56 = vpop.f32.mrf.mxu0 }
 0x160   :  { %v786_v58 = vmul.f32 %v1929_v54, %v713_v55 }
 0x161   :  { %v1931_v60 = vpop.f32.mrf.mxu0 }
 0x162   :  { %v807_v61 = vpack.c.bf16 %v786_v58, %v785_v57  ;;  %v1932_v63 = vadd.f32 %v1931_v60, %v1930_v56  ;;  %v758_v56 = vpop.permute.xlu0 %757  ;;  %v763_v57 = vpop.permute.xlu1 %762 }
 0x163   :  { %v1933_v62 = vpop.f32.mrf.mxu0 }
 0x164   :  { %2092 = vmatprep.mubr.bf16.mxu1 %v807_v61  ;;  %v787_v6 = vmul.f32 %v1932_v63, %v718_v2  ;;  %v2526_v61 = vpop.f32.mrf.mxu1 }
 0x165   :  { %v1934_v1 = vpop.f32.mrf.mxu0 }
 0x166   :  { %v1935_v3 = vadd.f32 %v1934_v1, %v1933_v62  ;;  %v2528_v63 = vpop.f32.mrf.mxu1 }
 0x167   :  { %v1936_v5 = vpop.f32.mrf.mxu0 }
 0x168   :  { %v788_v7 = vmul.f32 %v1935_v3, %v723_v4  ;;  %v2530_v1 = vpop.f32.mrf.mxu1 }
 0x169   :  { %v1937_v9 = vpop.f32.mrf.mxu0 }
 0x16a   :  { %v808_v10 = vpack.c.bf16 %v788_v7, %v787_v6  ;;  %v1938_v12 = vadd.f32 %v1937_v9, %v1936_v5  ;;  %v2532_v2 = vpop.f32.mrf.mxu1 }
 0x16b   :  { %v1939_v11 = vpop.f32.mrf.mxu0 }
 0x16c   :  { %2093 = vmatmul.mubr.bf16.gmra.mxu1 %v808_v10  ;;  %v789_v19 = vmul.f32 %v1938_v12, %v728_v15  ;;  %v2534_v3 = vpop.f32.mrf.mxu1 }
 0x16d   :  { %v1940_v14 = vpop.f32.mrf.mxu0 }
 0x16e   :  { %v1941_v16 = vadd.f32 %v1940_v14, %v1939_v11  ;;  %v2536_v4 = vpop.f32.mrf.mxu1 }
 0x16f   :  { %v1942_v18 = vpop.f32.mrf.mxu0 }
 0x170   :  { %v790_v20 = vmul.f32 %v1941_v16, %v733_v17  ;;  %v2538_v5 = vpop.f32.mrf.mxu1 }
 0x171   :  { %v1943_v22 = vpop.f32.mrf.mxu0 }
 0x172   :  { %v809_v23 = vpack.c.bf16 %v790_v20, %v789_v19  ;;  %v1944_v25 = vadd.f32 %v1943_v22, %v1942_v18  ;;  %v2540_v6 = vpop.f32.mrf.mxu1 }
 0x173   :  { %v1945_v24 = vpop.f32.mrf.mxu0 }
 0x174   :  { %2096 = vmatprep.mubr.bf16.mxu1 %v809_v23  ;;  %v791_v32 = vmul.f32 %v1944_v25, %v738_v28  ;;  %v2542_v7 = vpop.f32.mrf.mxu1  ;;  %v2572_v25 = vld [vmem:[%s2649_s6] ss:$0 sm:$0xff]  ;;  %s2253_s6 = smov [#allocation9]  }
 0x175   :  { %v1946_v27 = vpop.f32.mrf.mxu0  ;;  %s1627_s20 = sshll.u32 %s2253_s6, 4  ;;  %s1628_s20 = int_to_ptr.vmem [resolvable:$true] %s1627_s20 }
 0x176   :  { %v1947_v29 = vadd.f32 %v1946_v27, %v1945_v24  ;;  %v2544_v9 = vpop.f32.mrf.mxu1  ;;  %s2221_s21 = scalar_lea.vmem %s1628_s20, 2048  ;;  %p2226_p2 = scmp.lt.s32.totalorder %s1628_s20, %s1628_s20 }
 0x177   :  { %v1948_v31 = vpop.f32.mrf.mxu0  ;;  %p2222_p1 = scmp.ne.s32.totalorder %s1628_s20, %s2221_s21  ;;  %p2227_p3 = scmp.lt.s32.totalorder %s2221_s21, %s2221_s21 }
 0x178   :  { %v792_v33 = vmul.f32 %v1947_v29, %v743_v30  ;;  %v2546_v10 = vpop.f32.mrf.mxu1 }
 0x179   :  { %v1949_v35 = vpop.f32.mrf.mxu0  ;;  %p2228_p4 = por %p2227_p3, %p2226_p2 }
 0x17a   :  { %v810_v36 = vpack.c.bf16 %v792_v33, %v791_v32  ;;  %v1950_v38 = vadd.f32 %v1949_v35, %v1948_v31  ;;  %v2548_v11 = vpop.f32.mrf.mxu1 }
 0x17b   :  { %v1951_v37 = vpop.f32.mrf.mxu0  ;;  %p2229_p5 = pnand %p2228_p4, %p2222_p1 }
 0x17c   :  { %2097 = vmatmul.mubr.bf16.gmra.mxu1 %v810_v36  ;;  %v793_v45 = vmul.f32 %v1950_v38, %v748_v41  ;;  %v2550_v12 = vpop.f32.mrf.mxu1 }
 0x17d   :  { %v1952_v40 = vpop.f32.mrf.mxu0 }
 0x17e   :  { %v1953_v42 = vadd.f32 %v1952_v40, %v1951_v37  ;;  %v2552_v14 = vpop.f32.mrf.mxu1 }
 0x17f   :  { %v1954_v44 = vpop.f32.mrf.mxu0 }
 0x180   :  { %v794_v46 = vmul.f32 %v1953_v42, %v753_v43  ;;  %v2554_v15 = vpop.f32.mrf.mxu1 }
 0x181   :  { %v1955_v48 = vpop.f32.mrf.mxu0 }
 0x182   :  { %v811_v49 = vpack.c.bf16 %v794_v46, %v793_v45  ;;  %v1956_v52 = vadd.f32 %v1955_v48, %v1954_v44  ;;  %v2556_v16 = vpop.f32.mrf.mxu1 }
 0x183   :  { %v1957_v50 = vpop.f32.mrf.mxu0 }
 0x184   :  { %2100 = vmatprep.mubr.bf16.mxu1 %v811_v49  ;;  %v795_v58 = vmul.f32 %v1956_v52, %v758_v56  ;;  %v2558_v17 = vpop.f32.mrf.mxu1 }
 0x185   :  { %v1958_v54 = vpop.f32.mrf.mxu0 }
 0x186   :  { %v1959_v55 = vadd.f32 %v1958_v54, %v1957_v50  ;;  %v2560_v18 = vpop.f32.mrf.mxu1 }
 0x188   :  { %v796_v60 = vmul.f32 %v1959_v55, %v763_v57  ;;  %v2562_v19 = vpop.f32.mrf.mxu1 }
 0x18a   :  { %v812_v62 = vpack.c.bf16 %v796_v60, %v795_v58  ;;  %v2564_v20 = vpop.f32.mrf.mxu1 }
 0x18c   :  { %2101 = vmatmul.mubr.bf16.gmra.mxu1 %v812_v62  ;;  %v2566_v22 = vpop.f32.mrf.mxu1 }
 0x1dc   :  { %v2074_v23 = vpop.f32.mrf.mxu1 }
 0x1dd   :  { %v1273_v24 = vadd.f32 %v2074_v23, %v2504_v51 }
 0x1de   :  { %v1264_v27 = vpop.f32.mrf.mxu1 }
 0x1df   :  { %v1265_v28 = vadd.f32 %v1264_v27, %v2506_v59  ;;  %v1400_v30 = vadd.f32 %v2572_v25, %v1273_v24 }
 0x1e0   :  { %v2075_v29 = vpop.f32.mrf.mxu1 }
 0x1e1   :  { %v1276_v31 = vadd.f32 %v2075_v29, %v2508_v0  ;;  %v1398_v33 = vadd.f32 %v2572_v25, %v1265_v28  ;;  %v1432_v36 = vmax.f32 %v1400_v30, 0.0 }
 0x1e2   :  { %v1267_v32 = vpop.f32.mrf.mxu1 }
 0x1e3   :  { %v1401_v35 = vadd.f32 %v2572_v25, %v1276_v31  ;;  %v1268_v51 = vadd.f32 %v1267_v32, %v2510_v8  ;;  %v1430_v40 = vmax.f32 %v1398_v33, 0.0 }
 0x1e5   :  { %v1433_v37 = vmax.f32 %v1401_v35, 0.0  ;;  %v1399_v38 = vadd.f32 %v2572_v25, %v1268_v51 }
 0x1e7   :  { %v1761_v41 = vpack.c.bf16 %v1433_v37, %v1432_v36  ;;  %v1431_v42 = vmax.f32 %v1399_v38, 0.0 }
 0x1e9   :  { %1833 = vst [vmem:[#allocation9 + $0x8] sm:$0xff] %v1761_v41   ;;  %v1756_v59 = vpack.c.bf16 %v1431_v42, %v1430_v40 }
 0x1eb   :  { %1757 = vst [vmem:[#allocation9] sm:$0xff] %v1756_v59  }
 0x1ec   :  { %v2078_v43 = vpop.f32.mrf.mxu1 }
 0x1ed   :  { %v1289_v0 = vadd.f32 %v2078_v43, %v2512_v13 }
 0x1ee   :  { %v1280_v44 = vpop.f32.mrf.mxu1 }
 0x1ef   :  { %v1281_v45 = vadd.f32 %v1280_v44, %v2514_v21  ;;  %v1404_v48 = vadd.f32 %v2572_v25, %v1289_v0 }
 0x1f0   :  { %v2079_v46 = vpop.f32.mrf.mxu1 }
 0x1f1   :  { %v1292_v8 = vadd.f32 %v2079_v46, %v2516_v26  ;;  %v1402_v50 = vadd.f32 %v2572_v25, %v1281_v45  ;;  %v1436_v55 = vmax.f32 %v1404_v48, 0.0 }
 0x1f2   :  { %v1283_v49 = vpop.f32.mrf.mxu1 }
 0x1f3   :  { %v1405_v52 = vadd.f32 %v2572_v25, %v1292_v8  ;;  %v1284_v54 = vadd.f32 %v1283_v49, %v2518_v34  ;;  %v1434_v13 = vmax.f32 %v1402_v50, 0.0 }
 0x1f5   :  { %v1437_v56 = vmax.f32 %v1405_v52, 0.0  ;;  %v1403_v57 = vadd.f32 %v2572_v25, %v1284_v54 }
 0x1f7   :  { %v1771_v58 = vpack.c.bf16 %v1437_v56, %v1436_v55  ;;  %v1435_v60 = vmax.f32 %v1403_v57, 0.0 }
 0x1f9   :  { %1835 = vst [vmem:[#allocation9 + $0x18] sm:$0xff] %v1771_v58   ;;  %v1766_v21 = vpack.c.bf16 %v1435_v60, %v1434_v13 }
 0x1fb   :  { %1834 = vst [vmem:[#allocation9 + $0x10] sm:$0xff] %v1766_v21  }
 0x1fc   :  { %v2082_v62 = vpop.f32.mrf.mxu1 }
 0x1fd   :  { %v1305_v26 = vadd.f32 %v2082_v62, %v2520_v39 }
 0x1fe   :  { %v1296_v23 = vpop.f32.mrf.mxu1 }
 0x1ff   :  { %v1297_v24 = vadd.f32 %v1296_v23, %v2522_v47  ;;  %v1408_v28 = vadd.f32 %v2572_v25, %v1305_v26 }
 0x200   :  { %v2083_v27 = vpop.f32.mrf.mxu1 }
 0x201   :  { %v1308_v34 = vadd.f32 %v2083_v27, %v2524_v53  ;;  %v1406_v30 = vadd.f32 %v2572_v25, %v1297_v24  ;;  %v1440_v33 = vmax.f32 %v1408_v28, 0.0 }
 0x202   :  { %v1299_v29 = vpop.f32.mrf.mxu1 }
 0x203   :  { %v1409_v31 = vadd.f32 %v2572_v25, %v1308_v34  ;;  %v1300_v32 = vadd.f32 %v1299_v29, %v2526_v61  ;;  %v1438_v39 = vmax.f32 %v1406_v30, 0.0 }
 0x205   :  { %v1441_v35 = vmax.f32 %v1409_v31, 0.0  ;;  %v1407_v51 = vadd.f32 %v2572_v25, %v1300_v32 }
 0x207   :  { %v1781_v36 = vpack.c.bf16 %v1441_v35, %v1440_v33  ;;  %v1439_v37 = vmax.f32 %v1407_v51, 0.0 }
 0x209   :  { %1837 = vst [vmem:[#allocation9 + $0x28] sm:$0xff] %v1781_v36   ;;  %v1776_v47 = vpack.c.bf16 %v1439_v37, %v1438_v39 }
 0x20b   :  { %1836 = vst [vmem:[#allocation9 + $0x20] sm:$0xff] %v1776_v47  }
 0x20c   :  { %v2086_v38 = vpop.f32.mrf.mxu1 }
 0x20d   :  { %v1321_v53 = vadd.f32 %v2086_v38, %v2528_v63 }
 0x20e   :  { %v1312_v40 = vpop.f32.mrf.mxu1 }
 0x20f   :  { %v1313_v41 = vadd.f32 %v1312_v40, %v2530_v1  ;;  %v1412_v59 = vadd.f32 %v2572_v25, %v1321_v53 }
 0x210   :  { %v2087_v42 = vpop.f32.mrf.mxu1 }
 0x211   :  { %v1324_v61 = vadd.f32 %v2087_v42, %v2532_v2  ;;  %v1410_v0 = vadd.f32 %v2572_v25, %v1313_v41  ;;  %v1444_v46 = vmax.f32 %v1412_v59, 0.0 }
 0x212   :  { %v1315_v43 = vpop.f32.mrf.mxu1 }
 0x213   :  { %v1413_v44 = vadd.f32 %v2572_v25, %v1324_v61  ;;  %v1316_v45 = vadd.f32 %v1315_v43, %v2534_v3  ;;  %v1442_v63 = vmax.f32 %v1410_v0, 0.0 }
 0x215   :  { %v1445_v48 = vmax.f32 %v1413_v44, 0.0  ;;  %v1411_v8 = vadd.f32 %v2572_v25, %v1316_v45 }
 0x217   :  { %v1791_v49 = vpack.c.bf16 %v1445_v48, %v1444_v46  ;;  %v1443_v50 = vmax.f32 %v1411_v8, 0.0 }
 0x219   :  { %1839 = vst [vmem:[#allocation9 + $0x38] sm:$0xff] %v1791_v49   ;;  %v1786_v1 = vpack.c.bf16 %v1443_v50, %v1442_v63 }
 0x21b   :  { %1838 = vst [vmem:[#allocation9 + $0x30] sm:$0xff] %v1786_v1  }
 0x21c   :  { %v2090_v52 = vpop.f32.mrf.mxu1 }
 0x21d   :  { %v1337_v2 = vadd.f32 %v2090_v52, %v2536_v4 }
 0x21e   :  { %v1328_v54 = vpop.f32.mrf.mxu1 }
 0x21f   :  { %v1329_v55 = vadd.f32 %v1328_v54, %v2538_v5  ;;  %v1416_v57 = vadd.f32 %v2572_v25, %v1337_v2 }
 0x220   :  { %v2091_v56 = vpop.f32.mrf.mxu1 }
 0x221   :  { %v1340_v3 = vadd.f32 %v2091_v56, %v2540_v6  ;;  %v1414_v58 = vadd.f32 %v2572_v25, %v1329_v55  ;;  %v1448_v62 = vmax.f32 %v1416_v57, 0.0 }
 0x222   :  { %v1331_v13 = vpop.f32.mrf.mxu1 }
 0x223   :  { %v1417_v60 = vadd.f32 %v2572_v25, %v1340_v3  ;;  %v1332_v21 = vadd.f32 %v1331_v13, %v2542_v7  ;;  %v1446_v4 = vmax.f32 %v1414_v58, 0.0 }
 0x225   :  { %v1449_v26 = vmax.f32 %v1417_v60, 0.0  ;;  %v1415_v23 = vadd.f32 %v2572_v25, %v1332_v21 }
 0x227   :  { %v1801_v24 = vpack.c.bf16 %v1449_v26, %v1448_v62  ;;  %v1447_v27 = vmax.f32 %v1415_v23, 0.0 }
 0x229   :  { %1841 = vst [vmem:[#allocation9 + $0x48] sm:$0xff] %v1801_v24   ;;  %v1796_v5 = vpack.c.bf16 %v1447_v27, %v1446_v4 }
 0x22b   :  { %1840 = vst [vmem:[#allocation9 + $0x40] sm:$0xff] %v1796_v5  }
 0x22c   :  { %v2094_v28 = vpop.f32.mrf.mxu1 }
 0x22d   :  { %v1353_v6 = vadd.f32 %v2094_v28, %v2544_v9 }
 0x22e   :  { %v1344_v34 = vpop.f32.mrf.mxu1 }
 0x22f   :  { %v1345_v29 = vadd.f32 %v1344_v34, %v2546_v10  ;;  %v1420_v31 = vadd.f32 %v2572_v25, %v1353_v6 }
 0x230   :  { %v2095_v30 = vpop.f32.mrf.mxu1 }
 0x231   :  { %v1356_v7 = vadd.f32 %v2095_v30, %v2548_v11  ;;  %v1418_v33 = vadd.f32 %v2572_v25, %v1345_v29  ;;  %v1452_v39 = vmax.f32 %v1420_v31, 0.0 }
 0x232   :  { %v1347_v32 = vpop.f32.mrf.mxu1 }
 0x233   :  { %v1421_v35 = vadd.f32 %v2572_v25, %v1356_v7  ;;  %v1348_v51 = vadd.f32 %v1347_v32, %v2550_v12  ;;  %v1450_v9 = vmax.f32 %v1418_v33, 0.0 }
 0x235   :  { %v1453_v36 = vmax.f32 %v1421_v35, 0.0  ;;  %v1419_v37 = vadd.f32 %v2572_v25, %v1348_v51 }
 0x237   :  { %v1811_v47 = vpack.c.bf16 %v1453_v36, %v1452_v39  ;;  %v1451_v38 = vmax.f32 %v1419_v37, 0.0 }
 0x239   :  { %1843 = vst [vmem:[#allocation9 + $0x58] sm:$0xff] %v1811_v47   ;;  %v1806_v10 = vpack.c.bf16 %v1451_v38, %v1450_v9 }
 0x23b   :  { %1842 = vst [vmem:[#allocation9 + $0x50] sm:$0xff] %v1806_v10  }
 0x23c   :  { %v2098_v53 = vpop.f32.mrf.mxu1 }
 0x23d   :  { %v1369_v11 = vadd.f32 %v2098_v53, %v2552_v14 }
 0x23e   :  { %v1360_v40 = vpop.f32.mrf.mxu1 }
 0x23f   :  { %v1361_v41 = vadd.f32 %v1360_v40, %v2554_v15  ;;  %v1424_v59 = vadd.f32 %v2572_v25, %v1369_v11 }
 0x240   :  { %v2099_v42 = vpop.f32.mrf.mxu1 }
 0x241   :  { %v1372_v12 = vadd.f32 %v2099_v42, %v2556_v16  ;;  %v1422_v43 = vadd.f32 %v2572_v25, %v1361_v41  ;;  %v1456_v45 = vmax.f32 %v1424_v59, 0.0 }
 0x242   :  { %v1363_v61 = vpop.f32.mrf.mxu1 }
 0x243   :  { %v1425_v0 = vadd.f32 %v2572_v25, %v1372_v12  ;;  %v1364_v44 = vadd.f32 %v1363_v61, %v2558_v17  ;;  %v1454_v14 = vmax.f32 %v1422_v43, 0.0 }
 0x245   :  { %v1457_v46 = vmax.f32 %v1425_v0, 0.0  ;;  %v1423_v48 = vadd.f32 %v2572_v25, %v1364_v44 }
 0x247   :  { %v1821_v8 = vpack.c.bf16 %v1457_v46, %v1456_v45  ;;  %v1455_v63 = vmax.f32 %v1423_v48, 0.0 }
 0x249   :  { %1845 = vst [vmem:[#allocation9 + $0x68] sm:$0xff] %v1821_v8   ;;  %v1816_v15 = vpack.c.bf16 %v1455_v63, %v1454_v14 }
 0x24b   :  { %1844 = vst [vmem:[#allocation9 + $0x60] sm:$0xff] %v1816_v15  }
 0x24c   :  { %v2102_v49 = vpop.f32.mrf.mxu1 }
 0x24d   :  { %v1385_v16 = vadd.f32 %v2102_v49, %v2560_v18 }
 0x24e   :  { %v1376_v50 = vpop.f32.mrf.mxu1 }
 0x24f   :  { %v1377_v1 = vadd.f32 %v1376_v50, %v2562_v19  ;;  %v1428_v2 = vadd.f32 %v2572_v25, %v1385_v16 }
 0x250   :  { %v2103_v52 = vpop.f32.mrf.mxu1 }
 0x251   :  { %v1388_v17 = vadd.f32 %v2103_v52, %v2564_v20  ;;  %v1426_v55 = vadd.f32 %v2572_v25, %v1377_v1  ;;  %v1460_v3 = vmax.f32 %v1428_v2, 0.0 }
 0x252   :  { %v1379_v54 = vpop.f32.mrf.mxu1 }
 0x253   :  { %v1429_v56 = vadd.f32 %v2572_v25, %v1388_v17  ;;  %v1380_v57 = vadd.f32 %v1379_v54, %v2566_v22  ;;  %v1458_v18 = vmax.f32 %v1426_v55, 0.0 }
 0x255   :  { %v1461_v13 = vmax.f32 %v1429_v56, 0.0  ;;  %v1427_v58 = vadd.f32 %v2572_v25, %v1380_v57 }
 0x257   :  { %v1831_v19 = vpack.c.bf16 %v1461_v13, %v1460_v3  ;;  %v1459_v60 = vmax.f32 %v1427_v58, 0.0 }
 0x259   :  { %1847 = vst [vmem:[#allocation9 + $0x78] sm:$0xff] %v1831_v19   ;;  %v1826_v21 = vpack.c.bf16 %v1459_v60, %v1458_v18 }
 0x25b   :  { %1846 = vst [vmem:[#allocation9 + $0x70] sm:$0xff] %v1826_v21  }
 0x25c   :  { %2232 = shalt.err (!%p2229_p5)
}
 0x25d   :  { %1633 = dma.vmem_to_hbm [thread:$0]  %s1628_s20, 2048, %s2650_s7, [#allocation5], %s2249_s29, %s2249_s29, %s2250_s30  }
 0x25e   :  { %2245 = dma.done.wait [#allocation5], 2048  }
 0x25f   :  { %2246 = vsyncadd [#allocation5], 4294965248 }
 0x260   :  { %1637 = vsyncpa [#allocation4], 1 }
 0x261   :  { %1638 = vsyncpa [#allocation7], 1 }
 0x262   :  { %1639 = vsyncpa [#allocation5], 1 }

</bundles_post_ra>
